<compile_context>
chip_gen: v5e
topology: v5e:2x2
jax: 0.10.0
libtpu: 0.0.40
codegen_flags: <defaults>
</compile_context>

<pallas_src>
import functools

import jax
import jax.numpy as jnp
from jax import lax
from jax.experimental import pallas as pl
from jax.experimental.pallas import tpu as pltpu

LANE = 128
SUBLANE = 8
NEG_SLOPE = 0.2          # atten_act = LeakyReLU(0.2)
MASK_FILL = -1e30        # finite fill for non-edges (avoids -inf -> NaN)

_VMEM = pl.BlockSpec(memory_space=pltpu.MemorySpace.VMEM)


def _round_up(x, m):
    return ((x + m - 1) // m) * m


# ----------------------------------------------------------------------------
# Kernel A (single block, runs once per forward):
#   Xp_aug = X @ Wt_aug + bt_aug   (theta with the atten_dst column folded in)
#   a_src  = one-time [1, N] row   (hoisted off the per-dst-tile path)
#   Y      = V2E @ Xp              (hg.v2e mean, bf16 MXU operands, f32 acc)
# ----------------------------------------------------------------------------
def _prep_kernel(x_ref, wt_ref, bt_ref, wsrc_ref, v2e_ref,
                 xp_ref, asrc_ref, y_ref):
    xp = jnp.dot(x_ref[...], wt_ref[...],
                 preferred_element_type=jnp.float32) + bt_ref[...]      # [Np, Cp]
    xp_ref[...] = xp

    # a_src as a [1, Np] row — single skinny contraction, done once here
    # instead of once per dst tile in the attention kernel.
    asrc_ref[...] = lax.dot_general(wsrc_ref[...], xp,
                                    (((1,), (1,)), ((), ())),
                                    preferred_element_type=jnp.float32)  # [1, Np]

    # hg.v2e(Xp, 'mean'):  Y = (De^-1 H^T) @ Xp
    y_ref[...] = jnp.dot(v2e_ref[...], xp.astype(jnp.bfloat16),
                         preferred_element_type=jnp.float32)             # [Ep, Cp]


# ----------------------------------------------------------------------------
# Kernel B (gridded over dst-row tiles, "parallel" axis):
#   masked softmax attention (g.v2v softmax_then_sum) + hg.e2v mean + ELU.
# ----------------------------------------------------------------------------
def _attn_kernel(dst_col, xp_full_ref, xp_tile_ref, asrc_ref, y_ref,
                 adj_ref, e2v_ref, o_ref):
    xp_full = xp_full_ref[...]                              # [Np, Cp] f32 (resident)
    a_dst = xp_tile_ref[...][:, dst_col:dst_col + 1]        # [Tm, 1]  folded theta col
    a_src = asrc_ref[...]                                   # [1, Np]

    # attention logits / LeakyReLU(0.2) for every (dst in tile, src)
    logits = a_dst + a_src                                  # [Tm, Np]
    scores = jnp.where(logits > 0, logits, NEG_SLOPE * logits)
    # TODO(synk): nn.Dropout (atten_dropout) treated as identity (eval mode).

    # masked row-softmax over src — no separate `masked` temporary; finite
    # fill only feeds the max, exp argument is clamped to <= 0.
    mask = adj_ref[...] > 0.5
    row_max = jnp.max(jnp.where(mask, scores, MASK_FILL), axis=1, keepdims=True)
    p = jnp.where(mask, jnp.exp(jnp.minimum(scores - row_max, 0.0)), 0.0)
    denom = jnp.sum(p, axis=1, keepdims=True)               # >= 1 for any row with edges
    inv_denom = pl.reciprocal(jnp.maximum(denom, 1e-6), approx=True)

    # softmax_then_sum with normalization deferred past the MXU
    x_g = jnp.dot(p.astype(jnp.bfloat16), xp_full.astype(jnp.bfloat16),
                  preferred_element_type=jnp.float32) * inv_denom        # [Tm, Cp]

    # hg.e2v(Y, 'mean'):  X_hg = (Dv^-1 H) @ Y
    x_hg = jnp.dot(e2v_ref[...], y_ref[...].astype(jnp.bfloat16),
                   preferred_element_type=jnp.float32)                   # [Tm, Cp]

    # X1 = (X_g + X_hg) / 2 ; act = ELU(alpha=1)
    x1 = 0.5 * (x_g + x_hg)
    o_ref[...] = jnp.where(x1 > 0, x1, jnp.exp(jnp.minimum(x1, 0.0)) - 1.0)


# ----------------------------------------------------------------------------
# One-time parameter / operator preparation (padding + dtype casts, host side).
# ----------------------------------------------------------------------------
def prepare_gat_hgnnplus(adj_mask, V2E, E2V, Wt, bt, w_src, w_dst, *, tile_m=256):
    """Wt:[Cin,Cout] (torch Linear weight^T), bt:[Cout], w_src/w_dst:[Cout]."""
    N = adj_mask.shape[0]
    E = V2E.shape[0]
    C_in, C_out = Wt.shape
    assert tile_m % SUBLANE == 0 and (LANE % tile_m == 0 or tile_m % LANE == 0)

    n_pad = _round_up(N, max(tile_m, LANE))
    e_pad = _round_up(E, LANE)
    cin_p = _round_up(C_in, LANE)
    cout_p = _round_up(C_out + 1, LANE)          # +1 lane: folded atten_dst column

    f32 = jnp.float32
    # theta weight with atten_dst folded in: column C_out of Xp_aug == a_dst.
    wt_aug = jnp.zeros((cin_p, cout_p), f32)
    wt_aug = wt_aug.at[:C_in, :C_out].set(Wt.astype(f32))
    wt_aug = wt_aug.at[:C_in, C_out].set((Wt @ w_dst).astype(f32))
    bt_aug = jnp.zeros((1, cout_p), f32)
    bt_aug = bt_aug.at[0, :C_out].set(bt.astype(f32))
    bt_aug = bt_aug.at[0, C_out].set(jnp.dot(bt, w_dst).astype(f32))
    wsrc_row = jnp.zeros((1, cout_p), f32).at[0, :C_out].set(w_src.astype(f32))

    bf16 = jnp.bfloat16     # halve the dominant O(N^2) adjacency bytes
    adj_p = jnp.zeros((n_pad, n_pad), bf16).at[:N, :N].set(adj_mask.astype(bf16))
    v2e_p = jnp.zeros((e_pad, n_pad), bf16).at[:E, :N].set(V2E.astype(bf16))
    e2v_p = jnp.zeros((n_pad, e_pad), bf16).at[:N, :E].set(E2V.astype(bf16))

    dims = dict(N=N, E=E, C_in=C_in, C_out=C_out, n_pad=n_pad, e_pad=e_pad,
                cin_p=cin_p, cout_p=cout_p, tile_m=tile_m)
    return dict(adj=adj_p, v2e=v2e_p, e2v=e2v_p, wt=wt_aug, bt=bt_aug,
                wsrc=wsrc_row, dims=dims)


# ----------------------------------------------------------------------------
# Forward: two pallas_calls (tiny prep + tiled attention/aggregation).
# Returns the padded, lane-dense [n_pad, cout_p] output; caller slices once.
# ----------------------------------------------------------------------------
def gat_hgnnplus_conv(X, prep):
    d = prep["dims"]
    n_pad, e_pad = d["n_pad"], d["e_pad"]
    cin_p, cout_p, tile_m = d["cin_p"], d["cout_p"], d["tile_m"]
    N, C_in = X.shape

    # per-call activation padding (parameters/operators were padded once)
    x_p = jnp.zeros((n_pad, cin_p), jnp.float32).at[:N, :C_in].set(X)

    # ---- kernel A: theta (+ folded a_dst), a_src row, hyperedge means ------
    xp_full, asrc_row, y = pl.pallas_call(
        _prep_kernel,
        out_shape=(jax.ShapeDtypeStruct((n_pad, cout_p), jnp.float32),
                   jax.ShapeDtypeStruct((1, n_pad), jnp.float32),
                   jax.ShapeDtypeStruct((e_pad, cout_p), jnp.float32)),
        in_specs=[_VMEM] * 5,
        out_specs=(_VMEM, _VMEM, _VMEM),
    )(x_p, prep["wt"], prep["bt"], prep["wsrc"], prep["v2e"])

    # ---- kernel B: masked softmax attention + both aggregations, dst-tiled -
    grid_m = n_pad // tile_m
    out_pad = pl.pallas_call(
        functools.partial(_attn_kernel, d["C_out"]),
        out_shape=jax.ShapeDtypeStruct((n_pad, cout_p), jnp.float32),
        grid=(grid_m,),
        in_specs=[
            pl.BlockSpec((n_pad, cout_p), lambda i: (0, 0)),    # Xp (full, resident)
            pl.BlockSpec((tile_m, cout_p), lambda i: (i, 0)),   # Xp dst tile (a_dst col)
            pl.BlockSpec((1, n_pad), lambda i: (0, 0)),         # a_src row (resident)
            pl.BlockSpec((e_pad, cout_p), lambda i: (0, 0)),    # Y (resident)
            pl.BlockSpec((tile_m, n_pad), lambda i: (i, 0)),    # adjacency tile (bf16)
            pl.BlockSpec((tile_m, e_pad), lambda i: (i, 0)),    # E2V tile (bf16)
        ],
        out_specs=pl.BlockSpec((tile_m, cout_p), lambda i: (i, 0)),
        compiler_params=pltpu.CompilerParams(
            dimension_semantics=("parallel",),           # megacore sharding on v7x
            vmem_limit_bytes=48 * 1024 * 1024),          # headroom below v7x 64 MiB
    )(xp_full, xp_full, asrc_row, y, prep["adj"], prep["e2v"])

    return out_pad   # padded + lane-dense; caller slices [:N, :C_out] once


# ----------------------------------------------------------------------------
# Pure-JAX f32 reference of the same math (correctness check).
# ----------------------------------------------------------------------------
def reference_forward(X, adj_mask, V2E, E2V, Wt, bt, w_src, w_dst):
    Xp = X @ Wt + bt
    a_src = Xp @ w_src.reshape(-1, 1)                 # [N, 1]
    a_dst = Xp @ w_dst.reshape(-1, 1)                 # [N, 1]
    logits = a_dst + a_src.T                          # [dst, src]
    scores = jnp.where(logits > 0, logits, NEG_SLOPE * logits)
    mask = adj_mask > 0.5
    masked = jnp.where(mask, scores, MASK_FILL)
    p = jnp.where(mask, jnp.exp(masked - masked.max(axis=1, keepdims=True)), 0.0)
    alpha = p / jnp.maximum(p.sum(axis=1, keepdims=True), 1e-30)
    X_g = alpha @ Xp
    X_hg = E2V @ (V2E @ Xp)
    X1 = 0.5 * (X_g + X_hg)
    return jnp.where(X1 > 0, X1, jnp.exp(jnp.minimum(X1, 0.0)) - 1.0)


# ----------------------------------------------------------------------------
# main
# ----------------------------------------------------------------------------
if __name__ == "__main__":
    N = 16        # number of vertices
    C_in = 8      # in_channels
    C_out = 16    # out_channels

    key = jax.random.PRNGKey(0)
    k_x, k_wt, k_bt, k_ws, k_wd = jax.random.split(key, 5)

    X = jax.random.normal(k_x, (N, C_in), dtype=jnp.float32)

    # Graph g: undirected ring + chords -> symmetric adjacency mask [dst, src]
    edges = [(i, (i + 1) % N) for i in range(N)] + [(0, 8), (2, 10), (4, 12), (6, 14)]
    adj = jnp.zeros((N, N), dtype=jnp.float32)
    for (u, v) in edges:
        adj = adj.at[v, u].set(1.0).at[u, v].set(1.0)

    # Hypergraph hg: incidence H [N, E]; every vertex in >= 1 hyperedge
    hyperedges = [
        [0, 1, 2, 3, 4],
        [4, 5, 6, 7],
        [7, 8, 9, 10, 11],
        [11, 12, 13, 14, 15, 0],
    ]
    E = len(hyperedges)
    H = jnp.zeros((N, E), dtype=jnp.float32)
    for e_idx, verts in enumerate(hyperedges):
        for v in verts:
            H = H.at[v, e_idx].set(1.0)
    de = jnp.maximum(H.sum(axis=0), 1.0)       # vertices per hyperedge
    dv = jnp.maximum(H.sum(axis=1), 1.0)       # hyperedges per vertex
    V2E = (H / de[None, :]).T                  # [E, N]
    E2V = H / dv[:, None]                      # [N, E]

    # Parameters (torch Linear layout transposed to [in, out])
    def lin_init(kw, fan_in, fan_out):
        s = 1.0 / jnp.sqrt(jnp.float32(fan_in))
        return jax.random.uniform(kw, (fan_in, fan_out), jnp.float32, -s, s)

    Wt = lin_init(k_wt, C_in, C_out)                                   # theta.weight^T
    s_in = 1.0 / jnp.sqrt(jnp.float32(C_in))
    bt = jax.random.uniform(k_bt, (C_out,), jnp.float32, -s_in, s_in)  # theta.bias
    w_src = lin_init(k_ws, C_out, 1).reshape(-1)                       # atten_src.weight
    w_dst = lin_init(k_wd, C_out, 1).reshape(-1)                       # atten_dst.weight

    # tile_m=64 so the demo (n_pad=128) actually exercises a 2-step grid;
    # use the default tile_m=256 for production-scale N.
    prep = prepare_gat_hgnnplus(adj, V2E, E2V, Wt, bt, w_src, w_dst, tile_m=64)

    out_pad = gat_hgnnplus_conv(X, prep)
    out_pad = jax.block_until_ready(out_pad)
    out = out_pad[:N, :C_out]                  # single slice of the padded result

    ref = reference_forward(X, adj, V2E, E2V, Wt, bt, w_src, w_dst)
    assert out.shape == (N, C_out), out.shape
    # bf16 MXU operands + approx reciprocal -> looser tolerance vs f32 reference
    assert jnp.allclose(out, ref, atol=3e-2, rtol=3e-2), (
        float(jnp.max(jnp.abs(out - ref))))

    print("KERNEL_OK")
</pallas_src>

<mosaic_0001>
module attributes {stable_mosaic.version = 11 : i64} {
  func.func @_prep_kernel(%arg0: memref<128x128xf32, #tpu.memory_space<vmem>>, %arg1: memref<128x128xf32, #tpu.memory_space<vmem>>, %arg2: memref<1x128xf32, #tpu.memory_space<vmem>>, %arg3: memref<1x128xf32, #tpu.memory_space<vmem>>, %arg4: memref<128x128xbf16, #tpu.memory_space<vmem>>, %arg5: memref<128x128xf32, #tpu.memory_space<vmem>>, %arg6: memref<1x128xf32, #tpu.memory_space<vmem>>, %arg7: memref<128x128xf32, #tpu.memory_space<vmem>>) attributes {dimension_semantics = [], scalar_prefetch = 0 : i64, scratch_operands = 0 : i64, tpu.core_type = #tpu.core_type<tc>} {
    %c0 = arith.constant 0 : index
    %c0_0 = arith.constant 0 : index
    %0 = vector.load %arg0[%c0, %c0_0] : memref<128x128xf32, #tpu.memory_space<vmem>>, vector<128x128xf32>
    %c0_1 = arith.constant 0 : index
    %c0_2 = arith.constant 0 : index
    %1 = vector.load %arg1[%c0_1, %c0_2] : memref<128x128xf32, #tpu.memory_space<vmem>>, vector<128x128xf32>
    %cst = arith.constant dense<0.000000e+00> : vector<128x128xf32>
    %2 = tpu.matmul %0, %1, %cst {dimension_numbers = #tpu.dot_dimension_numbers<[1], [0], [0], [1], [0, 0, 1, 1], [], []>} : vector<128x128xf32>, vector<128x128xf32>, vector<128x128xf32> -> vector<128x128xf32>
    %c0_3 = arith.constant 0 : index
    %c0_4 = arith.constant 0 : index
    %3 = vector.load %arg2[%c0_3, %c0_4] : memref<1x128xf32, #tpu.memory_space<vmem>>, vector<1x128xf32>
    %4 = vector.broadcast %3 : vector<1x128xf32> to vector<128x128xf32>
    %5 = arith.addf %2, %4 : vector<128x128xf32>
    %c0_5 = arith.constant 0 : index
    %c0_6 = arith.constant 0 : index
    %6 = vector.load %arg5[%c0_5, %c0_6] : memref<128x128xf32, #tpu.memory_space<vmem>>, vector<128x128xf32>
    tpu.vector_store %arg5[%c0_5, %c0_6], %5 {strides = array<i32>} : memref<128x128xf32, #tpu.memory_space<vmem>>, vector<128x128xf32>,
    %c0_7 = arith.constant 0 : index
    %c0_8 = arith.constant 0 : index
    %7 = vector.load %arg3[%c0_7, %c0_8] : memref<1x128xf32, #tpu.memory_space<vmem>>, vector<1x128xf32>
    %cst_9 = arith.constant dense<0.000000e+00> : vector<1x128xf32>
    %8 = tpu.matmul %7, %5, %cst_9 {dimension_numbers = #tpu.dot_dimension_numbers<[1], [1], [0], [0], [0, 0, 1, 0], [], []>} : vector<1x128xf32>, vector<128x128xf32>, vector<1x128xf32> -> vector<1x128xf32>
    %c0_10 = arith.constant 0 : index
    %c0_11 = arith.constant 0 : index
    %9 = vector.load %arg6[%c0_10, %c0_11] : memref<1x128xf32, #tpu.memory_space<vmem>>, vector<1x128xf32>
    tpu.vector_store %arg6[%c0_10, %c0_11], %8 {strides = array<i32>} : memref<1x128xf32, #tpu.memory_space<vmem>>, vector<1x128xf32>,
    %c0_12 = arith.constant 0 : index
    %c0_13 = arith.constant 0 : index
    %10 = vector.load %arg4[%c0_12, %c0_13] : memref<128x128xbf16, #tpu.memory_space<vmem>>, vector<128x128xbf16>
    %11 = arith.truncf %5 : vector<128x128xf32> to vector<128x128xbf16>
    %cst_14 = arith.constant dense<0.000000e+00> : vector<128x128xf32>
    %12 = tpu.matmul %10, %11, %cst_14 {dimension_numbers = #tpu.dot_dimension_numbers<[1], [0], [0], [1], [0, 0, 1, 1], [], []>} : vector<128x128xbf16>, vector<128x128xbf16>, vector<128x128xf32> -> vector<128x128xf32>
    %c0_15 = arith.constant 0 : index
    %c0_16 = arith.constant 0 : index
    %13 = vector.load %arg7[%c0_15, %c0_16] : memref<128x128xf32, #tpu.memory_space<vmem>>, vector<128x128xf32>
    tpu.vector_store %arg7[%c0_15, %c0_16], %12 {strides = array<i32>} : memref<128x128xf32, #tpu.memory_space<vmem>>, vector<128x128xf32>,
    return
  }
}

</mosaic_0001>

<bundles_post_ra>
// kernel: tpu_custom_call.1
= control target key start
LH: loop header
LB: loop body
LE: loop exit
PB: predicated region body
PF: predicated region fallthrough
CT: control target
= control target key end

     0   :  { %13 = vsyncpa [#allocation3], 0  ;;  %s734_s0 = inlined_call_operand.hbm [shape: f32[128,128], index: 0, kind: input, shape index: {}]   ;;  %s735_s1 = inlined_call_operand.hbm [shape: f32[128,128], index: 1, kind: input, shape index: {}]   ;;  %s736_s2 = inlined_call_operand.vmem [shape: f32[1,128], index: 2, kind: input, shape index: {}]   ;;  %s737_s3 = inlined_call_operand.vmem [shape: f32[1,128], index: 3, kind: input, shape index: {}]   ;;  %s738_s4 = inlined_call_operand.hbm [shape: bf16[128,128], index: 4, kind: input, shape index: {}]   ;;  %s739_s5 = inlined_call_operand.hbm [shape: f32[128,128], index: 5, kind: output, shape index: {0}]   ;;  %s740_s6 = inlined_call_operand.hbm [shape: f32[1,128], index: 6, kind: output, shape index: {1}]   ;;  %s741_s7 = inlined_call_operand.hbm [shape: f32[128,128], index: 7, kind: output, shape index: {2}]  }
   0x1   :  { %14 = vsyncpa [#allocation6], 0 }
   0x2   :  { %15 = vsyncpa [#allocation4], 0 }
   0x3   :  { %16 = vsyncpa [#allocation10], 0  ;;  %s34_s26 = sshll.u32 %s735_s1, 4  ;;  %s628_s27 = smov [#allocation5]   ;;  %s35_s26 = int_to_ptr.hbm [resolvable:$true] %s34_s26 }
   0x4   :  { %s36_s28 = sshll.u32 %s628_s27, 4  ;;  %s21_s8 = sshll.u32 %s734_s0, 4  ;;  %s37_s28 = int_to_ptr.vmem [resolvable:$true] %s36_s28  ;;  %s22_s8 = int_to_ptr.hbm [resolvable:$true] %s21_s8 }
   0x5   :  { %s629_s9 = smov 128   ;;  %s630_s10 = smov 8  }
   0x6   :  { %42 = dma.hbm_to_vmem [thread:$0]  %s35_s26, 2048, %s37_s28, [#allocation6], %s629_s9, %s629_s9, %s630_s10  }
   0x7   :  { %s631_s11 = smov [#allocation2]   ;;  %s51_s1 = sshll.u32 %s738_s4, 4  ;;  %s52_s1 = int_to_ptr.hbm [resolvable:$true] %s51_s1 }
   0x8   :  { %s23_s12 = sshll.u32 %s631_s11, 4  ;;  %s632_s0 = smov [#allocation7]   ;;  %s24_s12 = int_to_ptr.vmem [resolvable:$true] %s23_s12 }
   0x9   :  { %29 = dma.hbm_to_vmem [thread:$0]  %s22_s8, 2048, %s24_s12, [#allocation3], %s629_s9, %s629_s9, %s630_s10  }
   0xa   :  { %s53_s15 = sshll.u32 %s632_s0, 4  ;;  %s633_s16 = smov 64   ;;  %s54_s15 = int_to_ptr.vmem [resolvable:$true] %s53_s15 }
   0xb   :  { %s634_s17 = smov 4  }
   0xc   :  { %59 = dma.hbm_to_vmem [thread:$0]  %s52_s1, 1024, %s54_s15, [#allocation6], %s633_s16, %s633_s16, %s634_s17  }
   0xd   :  { %620 = dma.done.wait [#allocation3], 2048  }
   0xe   :  { %621 = vsyncadd [#allocation3], 4294965248 }
   0xf   :  { %622 = dma.done.wait [#allocation6], 3072  }
  0x10   :  { %623 = vsyncadd [#allocation6], 4294964224  ;;  %v103_v0 = vld [vmem:[#allocation5 + $0x78] sm:$0xff]  ;;  %v102_v1 = vld [vmem:[#allocation5 + $0x70] sm:$0xff]  ;;  %s354_s22 = sshll.u32 %s739_s5, 4  ;;  %s635_s23 = smov [#allocation8]   ;;  %s355_s22 = int_to_ptr.hbm [resolvable:$true] %s354_s22 }
  0x11   :  { %108 = vmatpush.msra.mxu0 %v103_v0  ;;  %441 = vmatpush.msra.mxu3 %v103_v0  ;;  %v101_v2 = vld [vmem:[#allocation5 + $0x68] sm:$0xff]  ;;  %v100_v3 = vld [vmem:[#allocation5 + $0x60] sm:$0xff]  ;;  %v99_v4 = vld [vmem:[#allocation5 + $0x58] sm:$0xff]  ;;  %s352_s24 = sshll.u32 %s635_s23, 4  ;;  %s368_s27 = sshll.u32 %s740_s6, 4  ;;  %s353_s24 = int_to_ptr.vmem [resolvable:$true] %s352_s24  ;;  %s369_s27 = int_to_ptr.hbm [resolvable:$true] %s368_s27 }
  0x12   :  { %v98_v5 = vld [vmem:[#allocation5 + $0x50] sm:$0xff]  ;;  %v97_v6 = vld [vmem:[#allocation5 + $0x48] sm:$0xff]  ;;  %v96_v7 = vld [vmem:[#allocation5 + $0x40] sm:$0xff]  ;;  %s637_s28 = smov [#allocation11]   ;;  %s378_s8 = sshll.u32 %s741_s7, 4  ;;  %s379_s8 = int_to_ptr.hbm [resolvable:$true] %s378_s8 }
  0x13   :  { %109 = vmatpush.msra.mxu0 %v102_v1  ;;  %442 = vmatpush.msra.mxu3 %v102_v1  ;;  %v95_v8 = vld [vmem:[#allocation5 + $0x38] sm:$0xff]  ;;  %v94_v9 = vld [vmem:[#allocation5 + $0x30] sm:$0xff]  ;;  %v93_v10 = vld [vmem:[#allocation5 + $0x28] sm:$0xff]  ;;  %s376_s29 = sshll.u32 %s637_s28, 4  ;;  %s377_s29 = int_to_ptr.vmem [resolvable:$true] %s376_s29 }
  0x14   :  { %v92_v11 = vld [vmem:[#allocation5 + $0x20] sm:$0xff]  ;;  %v91_v12 = vld [vmem:[#allocation5 + $0x18] sm:$0xff]  ;;  %v90_v13 = vld [vmem:[#allocation5 + $0x10] sm:$0xff] }
  0x15   :  { %110 = vmatpush.msra.mxu0 %v101_v2  ;;  %443 = vmatpush.msra.mxu3 %v101_v2  ;;  %v89_v14 = vld [vmem:[#allocation5 + $0x8] sm:$0xff]  ;;  %v88_v15 = vld [vmem:[#allocation5] sm:$0xff]  ;;  %v82_v17 = vld [vmem:[#allocation2 + $0x50] sm:$0xff] }
  0x16   :  { %v72_v16 = vld [vmem:[#allocation2] sm:$0xff]  ;;  %v73_v18 = vld [vmem:[#allocation2 + $0x8] sm:$0xff]  ;;  %v83_v19 = vld [vmem:[#allocation2 + $0x58] sm:$0xff] }
  0x17   :  { %111 = vmatpush.msra.mxu0 %v100_v3  ;;  %444 = vmatpush.msra.mxu3 %v100_v3  ;;  %v74_v20 = vld [vmem:[#allocation2 + $0x10] sm:$0xff]  ;;  %v84_v21 = vld [vmem:[#allocation2 + $0x60] sm:$0xff]  ;;  %v75_v22 = vld [vmem:[#allocation2 + $0x18] sm:$0xff] }
  0x18   :  { %v85_v23 = vld [vmem:[#allocation2 + $0x68] sm:$0xff]  ;;  %v76_v24 = vld [vmem:[#allocation2 + $0x20] sm:$0xff]  ;;  %v86_v25 = vld [vmem:[#allocation2 + $0x70] sm:$0xff] }
  0x19   :  { %112 = vmatpush.msra.mxu0 %v99_v4  ;;  %445 = vmatpush.msra.mxu3 %v99_v4  ;;  %v77_v26 = vld [vmem:[#allocation2 + $0x28] sm:$0xff]  ;;  %v87_v27 = vld [vmem:[#allocation2 + $0x78] sm:$0xff]  ;;  %v78_v28 = vld [vmem:[#allocation2 + $0x30] sm:$0xff] }
  0x1a   :  { %v79_v29 = vld [vmem:[#allocation2 + $0x38] sm:$0xff]  ;;  %v80_v30 = vld [vmem:[#allocation2 + $0x40] sm:$0xff]  ;;  %v81_v31 = vld [vmem:[#allocation2 + $0x48] sm:$0xff] }
  0x1b   :  { %113 = vmatpush.msra.mxu0 %v98_v5  ;;  %446 = vmatpush.msra.mxu3 %v98_v5  ;;  %v475_v32 = vld [vmem:[%s736_s2] ss:$0 sm:$0xff] }
  0x1d   :  { %114 = vmatpush.msra.mxu0 %v97_v6  ;;  %447 = vmatpush.msra.mxu3 %v97_v6 }
  0x1f   :  { %115 = vmatpush.msra.mxu0 %v96_v7  ;;  %448 = vmatpush.msra.mxu3 %v96_v7 }
  0x21   :  { %116 = vmatpush.msra.mxu0 %v95_v8  ;;  %449 = vmatpush.msra.mxu3 %v95_v8 }
  0x23   :  { %117 = vmatpush.msra.mxu0 %v94_v9  ;;  %450 = vmatpush.msra.mxu3 %v94_v9  ;;  %v436_v9 = vld [vmem:[#allocation7 + $0x18] sm:$0xff] }
  0x25   :  { %118 = vmatpush.msra.mxu0 %v93_v10  ;;  %451 = vmatpush.msra.mxu3 %v93_v10  ;;  %v433_v10 = vld [vmem:[#allocation7] sm:$0xff] }
  0x27   :  { %119 = vmatpush.msra.mxu0 %v92_v11  ;;  %452 = vmatpush.msra.mxu3 %v92_v11  ;;  %v437_v11 = vld [vmem:[#allocation7 + $0x20] sm:$0xff] }
  0x29   :  { %120 = vmatpush.msra.mxu0 %v91_v12  ;;  %453 = vmatpush.msra.mxu3 %v91_v12  ;;  %v434_v12 = vld [vmem:[#allocation7 + $0x8] sm:$0xff] }
  0x2b   :  { %121 = vmatpush.msra.mxu0 %v90_v13  ;;  %454 = vmatpush.msra.mxu3 %v90_v13  ;;  %v438_v13 = vld [vmem:[#allocation7 + $0x28] sm:$0xff] }
  0x2d   :  { %122 = vmatpush.msra.mxu0 %v89_v14  ;;  %455 = vmatpush.msra.mxu3 %v89_v14  ;;  %v435_v14 = vld [vmem:[#allocation7 + $0x10] sm:$0xff] }
  0x2f   :  { %123 = vmatpush.msra.mxu0 %v88_v15  ;;  %456 = vmatpush.msra.mxu3 %v88_v15  ;;  %v189_v15 = vld [vmem:[%s737_s3] sm:$0x1]  ;;  %s636_s3 = smov [#allocation9]  }
  0x30   :  { %124 = vmatmul.f32.vlgmr.msra.gmra.mxu0 %v72_v16  ;;  %154 = vmatmul.f32.vlgmr.msra.gmra.mxu3 %v82_v17  ;;  %v439_v16 = vld [vmem:[#allocation7 + $0x30] sm:$0xff]  ;;  %v440_v17 = vld [vmem:[#allocation7 + $0x38] sm:$0xff]  ;;  %s366_s5 = sshll.u32 %s636_s3, 4  ;;  %s367_s5 = int_to_ptr.vmem [resolvable:$true] %s366_s5 }
  0x38   :  { %127 = vmatmul.f32.gmra.mxu0 %v73_v18  ;;  %157 = vmatmul.f32.gmra.mxu3 %v83_v19 }
  0x40   :  { %130 = vmatmul.f32.gmra.mxu0 %v74_v20  ;;  %160 = vmatmul.f32.gmra.mxu3 %v84_v21 }
  0x48   :  { %133 = vmatmul.f32.gmra.mxu0 %v75_v22  ;;  %163 = vmatmul.f32.gmra.mxu3 %v85_v23 }
  0x50   :  { %136 = vmatmul.f32.gmra.mxu0 %v76_v24  ;;  %166 = vmatmul.f32.gmra.mxu3 %v86_v25 }
  0x58   :  { %139 = vmatmul.f32.gmra.mxu0 %v77_v26  ;;  %169 = vmatmul.f32.gmra.mxu3 %v87_v27 }
  0x60   :  { %142 = vmatmul.f32.gmra.mxu0 %v78_v28 }
  0x68   :  { %145 = vmatmul.f32.gmra.mxu0 %v79_v29 }
  0x70   :  { %148 = vmatmul.f32.gmra.mxu0 %v80_v30 }
  0x78   :  { %151 = vmatmul.f32.gmra.mxu0 %v81_v31 }
  0xad   :  { %v125_v33 = vpop.f32.mrf.mxu0 }
  0xae   :  { %v696_v34 = vadd.f32 %v475_v32, %v125_v33 }
  0xb0   :  { %173 = vst [vmem:[#allocation8] sm:$0xff] %v696_v34 }
  0xb3   :  { %v155_v35 = vpop.f32.mrf.mxu3 }
  0xb4   :  { %v156_v36 = vadd.f32 %v475_v32, %v155_v35 }
  0xb5   :  { %v128_v37 = vpop.f32.mrf.mxu0 }
  0xb6   :  { %183 = vst [vmem:[#allocation8 + $0x50] sm:$0xff] %v156_v36  ;;  %v699_v38 = vadd.f32 %v475_v32, %v128_v37 }
  0xb8   :  { %174 = vst [vmem:[#allocation8 + $0x8] sm:$0xff] %v699_v38  ;;  %v227_v8 = vpack.c.bf16 %v699_v38, %v696_v34 }
  0xbb   :  { %v158_v39 = vpop.f32.mrf.mxu3 }
  0xbc   :  { %v159_v40 = vadd.f32 %v475_v32, %v158_v39 }
  0xbd   :  { %v131_v41 = vpop.f32.mrf.mxu0 }
  0xbe   :  { %184 = vst [vmem:[#allocation8 + $0x58] sm:$0xff] %v159_v40  ;;  %v702_v42 = vadd.f32 %v475_v32, %v131_v41  ;;  %v232_v63 = vpack.c.bf16 %v159_v40, %v156_v36 }
  0xc0   :  { %175 = vst [vmem:[#allocation8 + $0x10] sm:$0xff] %v702_v42 }
  0xc3   :  { %v161_v43 = vpop.f32.mrf.mxu3 }
  0xc4   :  { %v162_v44 = vadd.f32 %v475_v32, %v161_v43 }
  0xc5   :  { %v134_v45 = vpop.f32.mrf.mxu0 }
  0xc6   :  { %185 = vst [vmem:[#allocation8 + $0x60] sm:$0xff] %v162_v44  ;;  %v705_v46 = vadd.f32 %v475_v32, %v134_v45 }
  0xc8   :  { %176 = vst [vmem:[#allocation8 + $0x18] sm:$0xff] %v705_v46  ;;  %v228_v7 = vpack.c.bf16 %v705_v46, %v702_v42 }
  0xcb   :  { %v164_v47 = vpop.f32.mrf.mxu3 }
  0xcc   :  { %v165_v48 = vadd.f32 %v475_v32, %v164_v47 }
  0xcd   :  { %v137_v49 = vpop.f32.mrf.mxu0 }
  0xce   :  { %186 = vst [vmem:[#allocation8 + $0x68] sm:$0xff] %v165_v48  ;;  %v138_v50 = vadd.f32 %v475_v32, %v137_v49  ;;  %v233_v60 = vpack.c.bf16 %v165_v48, %v162_v44 }
  0xd0   :  { %177 = vst [vmem:[#allocation8 + $0x20] sm:$0xff] %v138_v50 }
  0xd3   :  { %v167_v51 = vpop.f32.mrf.mxu3 }
  0xd4   :  { %v168_v52 = vadd.f32 %v475_v32, %v167_v51 }
  0xd5   :  { %v140_v53 = vpop.f32.mrf.mxu0 }
  0xd6   :  { %187 = vst [vmem:[#allocation8 + $0x70] sm:$0xff] %v168_v52  ;;  %v141_v54 = vadd.f32 %v475_v32, %v140_v53 }
  0xd8   :  { %178 = vst [vmem:[#allocation8 + $0x28] sm:$0xff] %v141_v54  ;;  %v229_v6 = vpack.c.bf16 %v141_v54, %v138_v50 }
  0xdb   :  { %v170_v55 = vpop.f32.mrf.mxu3 }
  0xdc   :  { %v171_v56 = vadd.f32 %v475_v32, %v170_v55 }
  0xdd   :  { %v143_v57 = vpop.f32.mrf.mxu0 }
  0xde   :  { %188 = vst [vmem:[#allocation8 + $0x78] sm:$0xff] %v171_v56  ;;  %v144_v58 = vadd.f32 %v475_v32, %v143_v57  ;;  %190 = vmatpush.xpose.msrb.mxu3 %v171_v56  ;;  %v234_v59 = vpack.c.bf16 %v171_v56, %v168_v52 }
  0xe0   :  { %179 = vst [vmem:[#allocation8 + $0x30] sm:$0xff] %v144_v58  ;;  %283 = vmatpush.bf16.msra.mxu1 %v234_v59  ;;  %457 = vmatpush.bf16.msra.mxu2 %v234_v59 }
  0xe2   :  { %191 = vmatpush.xpose.msrb.mxu3 %v168_v52 }
  0xe4   :  { %284 = vmatpush.bf16.msra.mxu1 %v233_v60  ;;  %458 = vmatpush.bf16.msra.mxu2 %v233_v60 }
  0xe5   :  { %v146_v61 = vpop.f32.mrf.mxu0 }
  0xe6   :  { %v147_v62 = vadd.f32 %v475_v32, %v146_v61  ;;  %192 = vmatpush.xpose.msrb.mxu3 %v165_v48 }
  0xe8   :  { %180 = vst [vmem:[#allocation8 + $0x38] sm:$0xff] %v147_v62  ;;  %285 = vmatpush.bf16.msra.mxu1 %v232_v63  ;;  %459 = vmatpush.bf16.msra.mxu2 %v232_v63  ;;  %v230_v5 = vpack.c.bf16 %v147_v62, %v144_v58 }
  0xea   :  { %193 = vmatpush.xpose.msrb.mxu3 %v162_v44 }
  0xed   :  { %v149_v0 = vpop.f32.mrf.mxu0 }
  0xee   :  { %v150_v1 = vadd.f32 %v475_v32, %v149_v0  ;;  %194 = vmatpush.xpose.msrb.mxu3 %v159_v40 }
  0xf0   :  { %181 = vst [vmem:[#allocation8 + $0x40] sm:$0xff] %v150_v1 }
  0xf2   :  { %195 = vmatpush.xpose.msrb.mxu3 %v156_v36 }
  0xf5   :  { %v152_v2 = vpop.f32.mrf.mxu0 }
  0xf6   :  { %v153_v3 = vadd.f32 %v475_v32, %v152_v2 }
  0xf8   :  { %182 = vst [vmem:[#allocation8 + $0x48] sm:$0xff] %v153_v3  ;;  %196 = vmatpush.xpose.msrb.mxu3 %v153_v3  ;;  %v231_v4 = vpack.c.bf16 %v153_v3, %v150_v1 }
  0xf9   :  { %360 = dma.vmem_to_hbm [thread:$0]  %s353_s24, 2048, %s355_s22, [#allocation4], %s629_s9, %s629_s9, %s630_s10  }
  0xfa   :  { %286 = vmatpush.bf16.msra.mxu1 %v231_v4  ;;  %460 = vmatpush.bf16.msra.mxu2 %v231_v4 }
  0xfc   :  { %197 = vmatpush.xpose.msrb.mxu3 %v150_v1 }
  0xfe   :  { %287 = vmatpush.bf16.msra.mxu1 %v230_v5  ;;  %461 = vmatpush.bf16.msra.mxu2 %v230_v5 }
 0x100   :  { %198 = vmatpush.xpose.msrb.mxu3 %v147_v62 }
 0x102   :  { %288 = vmatpush.bf16.msra.mxu1 %v229_v6  ;;  %462 = vmatpush.bf16.msra.mxu2 %v229_v6 }
 0x104   :  { %199 = vmatpush.xpose.msrb.mxu3 %v144_v58 }
 0x106   :  { %289 = vmatpush.bf16.msra.mxu1 %v228_v7  ;;  %463 = vmatpush.bf16.msra.mxu2 %v228_v7 }
 0x108   :  { %200 = vmatpush.xpose.msrb.mxu3 %v141_v54 }
 0x10a   :  { %290 = vmatpush.bf16.msra.mxu1 %v227_v8  ;;  %464 = vmatpush.bf16.msra.mxu2 %v227_v8 }
 0x10c   :  { %201 = vmatpush.xpose.msrb.mxu3 %v138_v50 }
 0x10d   :  { %306 = vmatmul.bf16.vlgmr.msra.gmra.mxu2 %v436_v9  ;;  %291 = vmatmul.bf16.vlgmr.msra.gmra.mxu1 %v433_v10 }
 0x110   :  { %202 = vmatpush.xpose.msrb.mxu3 %v705_v46 }
 0x114   :  { %203 = vmatpush.xpose.msrb.mxu3 %v702_v42 }
 0x118   :  { %204 = vmatpush.xpose.msrb.mxu3 %v699_v38 }
 0x11c   :  { %205 = vmatpush.xpose.msrb.mxu3 %v696_v34 }
 0x11d   :  { %311 = vmatmul.bf16.gmra.mxu2 %v437_v11  ;;  %296 = vmatmul.bf16.gmra.mxu1 %v434_v12 }
 0x11f   :  { %206 = vmatmul.f32.vlgmr.msrb.gmra.mxu3 %v189_v15 }
 0x12d   :  { %316 = vmatmul.bf16.gmra.mxu2 %v438_v13  ;;  %301 = vmatmul.bf16.gmra.mxu1 %v435_v14 }
 0x13d   :  { %321 = vmatmul.bf16.gmra.mxu2 %v439_v16 }
 0x14d   :  { %326 = vmatmul.bf16.gmra.mxu2 %v440_v17 }
 0x18a   :  { %v292_v18 = vpop.f32.mrf.mxu1 }
 0x18b   :  { %332 = vst [vmem:[#allocation11] sm:$0xff] %v292_v18 }
 0x190   :  { %v307_v19 = vpop.f32.mrf.mxu2 }
 0x191   :  { %338 = vst [vmem:[#allocation11 + $0x30] sm:$0xff] %v307_v19 }
 0x192   :  { %v294_v20 = vpop.f32.mrf.mxu1 }
 0x193   :  { %333 = vst [vmem:[#allocation11 + $0x8] sm:$0xff] %v294_v20 }
 0x198   :  { %v309_v21 = vpop.f32.mrf.mxu2 }
 0x199   :  { %339 = vst [vmem:[#allocation11 + $0x38] sm:$0xff] %v309_v21 }
 0x19a   :  { %v297_v22 = vpop.f32.mrf.mxu1 }
 0x19b   :  { %334 = vst [vmem:[#allocation11 + $0x10] sm:$0xff] %v297_v22 }
 0x1a0   :  { %v312_v23 = vpop.f32.mrf.mxu2 }
 0x1a1   :  { %340 = vst [vmem:[#allocation11 + $0x40] sm:$0xff] %v312_v23 }
 0x1a2   :  { %v299_v24 = vpop.f32.mrf.mxu1  ;;  %v207_v28 = vpop.f32.mrf.mxu3 }
 0x1a3   :  { %335 = vst [vmem:[#allocation11 + $0x18] sm:$0xff] %v299_v24 }
 0x1a4   :  { %210 = vst [vmem:[#allocation9] sm:$0x1] %v207_v28 }
 0x1a5   :  { %371 = dma.vmem_to_hbm [thread:$0]  %s367_s5, 16, %s369_s27, [#allocation10]  }
 0x1a8   :  { %v314_v25 = vpop.f32.mrf.mxu2 }
 0x1a9   :  { %341 = vst [vmem:[#allocation11 + $0x48] sm:$0xff] %v314_v25 }
 0x1aa   :  { %v302_v26 = vpop.f32.mrf.mxu1 }
 0x1ab   :  { %336 = vst [vmem:[#allocation11 + $0x20] sm:$0xff] %v302_v26 }
 0x1b0   :  { %v317_v27 = vpop.f32.mrf.mxu2 }
 0x1b1   :  { %342 = vst [vmem:[#allocation11 + $0x50] sm:$0xff] %v317_v27 }
 0x1b2   :  { %v304_v29 = vpop.f32.mrf.mxu1 }
 0x1b3   :  { %337 = vst [vmem:[#allocation11 + $0x28] sm:$0xff] %v304_v29 }
 0x1b8   :  { %v319_v30 = vpop.f32.mrf.mxu2 }
 0x1b9   :  { %343 = vst [vmem:[#allocation11 + $0x58] sm:$0xff] %v319_v30 }
 0x1c0   :  { %v322_v31 = vpop.f32.mrf.mxu2 }
 0x1c1   :  { %344 = vst [vmem:[#allocation11 + $0x60] sm:$0xff] %v322_v31 }
 0x1c8   :  { %v324_v32 = vpop.f32.mrf.mxu2 }
 0x1c9   :  { %345 = vst [vmem:[#allocation11 + $0x68] sm:$0xff] %v324_v32 }
 0x1d0   :  { %v327_v33 = vpop.f32.mrf.mxu2 }
 0x1d1   :  { %346 = vst [vmem:[#allocation11 + $0x70] sm:$0xff] %v327_v33 }
 0x1d8   :  { %v329_v34 = vpop.f32.mrf.mxu2 }
 0x1d9   :  { %347 = vst [vmem:[#allocation11 + $0x78] sm:$0xff] %v329_v34 }
 0x1da   :  { %384 = dma.vmem_to_hbm [thread:$0]  %s377_s29, 2048, %s379_s8, [#allocation10], %s629_s9, %s629_s9, %s630_s10  }
 0x1db   :  { %624 = dma.done.wait [#allocation4], 2048  }
 0x1dc   :  { %625 = vsyncadd [#allocation4], 4294965248 }
 0x1dd   :  { %626 = dma.done.wait [#allocation10], 2064  }
 0x1de   :  { %627 = vsyncadd [#allocation10], 4294965232 }
 0x1df   :  { %397 = vsyncpa [#allocation3], 1 }
 0x1e0   :  { %398 = vsyncpa [#allocation6], 1 }
 0x1e1   :  { %399 = vsyncpa [#allocation4], 1 }
 0x1e2   :  { %400 = vsyncpa [#allocation10], 1 }

</bundles_post_ra>
